<compile_context>
chip_gen: v6e
topology: v6e:2x2x1
jax: 0.10.0
libtpu: 0.0.40
codegen_flags: <defaults>
</compile_context>

<pallas_src>
import functools

import jax
import jax.numpy as jnp
from jax.experimental import pallas as pl
from jax.experimental.pallas import tpu as pltpu

HIDDEN = 100  # logical hidden width (matches the PyTorch module)


def _round_up(x: int, m: int) -> int:
    return (x + m - 1) // m * m


def _pad2(a, rows: int, cols: int):
    return jnp.pad(a, ((0, rows - a.shape[0]), (0, cols - a.shape[1])))


def _pick_tile(B: int) -> int:
    """Batch-tile rows per grid step."""
    if B <= 32:
        return _round_up(B, 16)              # tiny batches: single step
    if B <= 4096:
        return _round_up(pl.cdiv(B, 2), 16)  # >=2 steps so both v7x TCs run
    return 2048                              # large B: big tiles (~85% HBM roofline)


def mlp_kernel(x_ref, w1_ref, b1_ref, w23_ref, b23_ref, o_ref):
    # Cast x to bf16 in-kernel (free on the VPU; saves a wrapper-side HBM pass).
    x = x_ref[...].astype(jnp.bfloat16)
    # Layer 1: Linear + ReLU (bf16 operands, f32 MXU accumulation, f32 bias add).
    h1 = jnp.dot(x, w1_ref[...], preferred_element_type=jnp.float32) + b1_ref[...]
    h1 = jnp.maximum(h1, 0.0).astype(jnp.bfloat16)
    # Folded layers 2+3: single Linear with W23 = W2 @ W3, b23 = b2 @ W3 + b3.
    out = jnp.dot(h1, w23_ref[...], preferred_element_type=jnp.float32) + b23_ref[...]
    o_ref[...] = out.astype(o_ref.dtype)


def prepare_params(w1, b1, w2, b2, w3, b3):
    """One-time host-side prep: fold L2/L3, pad to lane-dense 128, cast to bf16.

    Weights stored as (in, out) = transpose of PyTorch's (out, in) layout.
    Call once and reuse the results across forward calls.
    """
    IN, HID = w1.shape
    OUT = w3.shape[1]
    HID_P = _round_up(HID, 128)   # 100 -> 128
    OUT_P = _round_up(OUT, 128)   # e.g. 16 -> 128

    # Exact (f32) algebraic fold of the two activation-free linear layers.
    w23 = w2 @ w3                                             # (HID, OUT)
    b23 = b2.reshape(1, -1) @ w3 + b3.reshape(1, -1)          # (1, OUT)

    w1p = _pad2(w1, IN, HID_P).astype(jnp.bfloat16)
    w23p = _pad2(w23, HID_P, OUT_P).astype(jnp.bfloat16)
    b1p = _pad2(b1.reshape(1, -1), 1, HID_P).astype(jnp.float32)
    b23p = _pad2(b23, 1, OUT_P).astype(jnp.float32)
    return w1p, b1p, w23p, b23p


@functools.partial(jax.jit, static_argnames=("out_features",))
def mlp_forward(x, w1p, b1p, w23p, b23p, *, out_features):
    """x: (B, IN) f32. w1p/b1p/w23p/b23p from prepare_params (padded, bf16/f32)."""
    B, IN = x.shape
    HID_P = w1p.shape[1]
    OUT_P = w23p.shape[1]

    TB = _pick_tile(B)
    B_pad = _round_up(B, TB)
    xp = jnp.pad(x, ((0, B_pad - B), (0, 0)))   # f32; cast to bf16 in-kernel

    grid = (B_pad // TB,)

    flops = 2 * B_pad * (IN * HID_P + HID_P * OUT_P)
    bytes_accessed = (
        xp.size * 4
        + (w1p.size + w23p.size) * 2
        + (b1p.size + b23p.size) * 4
        + B_pad * OUT_P * 2
    )

    # VMEM: double-buffered x/out tiles + resident weights (+ headroom).
    tile_bytes = TB * IN * 4 + TB * OUT_P * 2
    weight_bytes = (w1p.size + w23p.size) * 2 + (b1p.size + b23p.size) * 4
    vmem_limit = int(min(64 << 20, max(16 << 20, 4 * tile_bytes + 2 * weight_bytes + (2 << 20))))

    out_padded = pl.pallas_call(
        mlp_kernel,
        out_shape=jax.ShapeDtypeStruct((B_pad, OUT_P), jnp.bfloat16),
        grid=grid,
        in_specs=[
            pl.BlockSpec((TB, IN), lambda i: (i, 0)),        # x: tiled over batch
            pl.BlockSpec((IN, HID_P), lambda i: (0, 0)),     # W1: VMEM-resident
            pl.BlockSpec((1, HID_P), lambda i: (0, 0)),      # b1: resident
            pl.BlockSpec((HID_P, OUT_P), lambda i: (0, 0)),  # W23: resident
            pl.BlockSpec((1, OUT_P), lambda i: (0, 0)),      # b23: resident
        ],
        out_specs=pl.BlockSpec((TB, OUT_P), lambda i: (i, 0)),
        compiler_params=pltpu.CompilerParams(
            dimension_semantics=("parallel",),
            vmem_limit_bytes=vmem_limit,
        ),
        cost_estimate=pl.CostEstimate(
            flops=flops, transcendentals=0, bytes_accessed=int(bytes_accessed)
        ),
    )(xp, w1p, b1p, w23p, b23p)

    # Slice away batch / lane padding (padded rows/cols are garbage/zero by design).
    return out_padded[:B, :out_features]


def init_linear_params(key, in_features, out_features):
    # Deterministic init mirroring nn.Linear's uniform(-1/sqrt(in), 1/sqrt(in)).
    kw, kb = jax.random.split(key)
    bound = 1.0 / jnp.sqrt(jnp.float32(in_features))
    # Stored as (in_features, out_features) = transpose of PyTorch's (out, in).
    w = jax.random.uniform(kw, (in_features, out_features), jnp.float32, -bound, bound)
    b = jax.random.uniform(kb, (1, out_features), jnp.float32, -bound, bound)
    return w, b


if __name__ == "__main__":
    input_dim, output_dim = 32, 16
    batch = 8

    key = jax.random.PRNGKey(0)
    k_x, k1, k2, k3 = jax.random.split(key, 4)

    x = jax.random.normal(k_x, (batch, input_dim), jnp.float32)
    w1, b1 = init_linear_params(k1, input_dim, HIDDEN)
    w2, b2 = init_linear_params(k2, HIDDEN, HIDDEN)
    w3, b3 = init_linear_params(k3, HIDDEN, output_dim)

    # One-time weight prep (fold + pad + bf16 cast), hoisted out of the call path.
    params = prepare_params(w1, b1, w2, b2, w3, b3)
    params = jax.tree_util.tree_map(jax.block_until_ready, params)

    out = mlp_forward(x, *params, out_features=output_dim)
    out = jax.block_until_ready(out)
    assert out.shape == (batch, output_dim)

    # Reference 1: same folded bf16 math path (bf16 operands, f32 accumulation,
    # bf16 output) — tight check.
    w23 = w2 @ w3
    b23 = b2 @ w3 + b3
    xb = x.astype(jnp.bfloat16)
    h1 = jnp.maximum(
        jnp.dot(xb, w1.astype(jnp.bfloat16), preferred_element_type=jnp.float32) + b1, 0.0
    ).astype(jnp.bfloat16)
    ref_bf16 = (
        jnp.dot(h1, w23.astype(jnp.bfloat16), preferred_element_type=jnp.float32) + b23
    ).astype(jnp.bfloat16)
    assert jnp.allclose(
        out.astype(jnp.float32), ref_bf16.astype(jnp.float32), atol=1e-2, rtol=1e-2
    )

    # Reference 2: full f32 forward (PyTorch semantics) — loose sanity check on
    # the bf16 quantization error.
    ref_f32 = jnp.maximum(x @ w1 + b1, 0.0)
    ref_f32 = ref_f32 @ w2 + b2
    ref_f32 = ref_f32 @ w3 + b3
    assert jnp.allclose(out.astype(jnp.float32), ref_f32, atol=6e-2, rtol=6e-2)

    print("KERNEL_OK")
</pallas_src>

<mosaic_0001>
module attributes {stable_mosaic.version = 11 : i64} {
  func.func @mlp_kernel(%arg0: i32, %arg1: memref<16x32xf32, #tpu.memory_space<vmem>>, %arg2: memref<32x128xbf16, #tpu.memory_space<vmem>>, %arg3: memref<1x128xf32, #tpu.memory_space<vmem>>, %arg4: memref<128x128xbf16, #tpu.memory_space<vmem>>, %arg5: memref<1x128xf32, #tpu.memory_space<vmem>>, %arg6: memref<16x128xbf16, #tpu.memory_space<vmem>>) attributes {dimension_semantics = [#tpu.dimension_semantics<parallel>], iteration_bounds = array<i64: 1>, scalar_prefetch = 0 : i64, scratch_operands = 0 : i64, tpu.core_type = #tpu.core_type<tc>, window_params = [{transform_indices = @transform_0, window_bounds = array<i64: 16, 32>}, {pipeline_mode = #tpu.pipeline_mode<synchronous>, transform_indices = @transform_1, window_bounds = array<i64: 32, 128>}, {pipeline_mode = #tpu.pipeline_mode<synchronous>, transform_indices = @transform_2, window_bounds = array<i64: 1, 128>}, {pipeline_mode = #tpu.pipeline_mode<synchronous>, transform_indices = @transform_3, window_bounds = array<i64: 128, 128>}, {pipeline_mode = #tpu.pipeline_mode<synchronous>, transform_indices = @transform_4, window_bounds = array<i64: 1, 128>}, {transform_indices = @transform_5, window_bounds = array<i64: 16, 128>}]} {
    %c0 = arith.constant 0 : index
    %c0_0 = arith.constant 0 : index
    %0 = vector.load %arg1[%c0, %c0_0] : memref<16x32xf32, #tpu.memory_space<vmem>>, vector<16x32xf32>
    %1 = arith.truncf %0 : vector<16x32xf32> to vector<16x32xbf16>
    %c0_1 = arith.constant 0 : index
    %c0_2 = arith.constant 0 : index
    %2 = vector.load %arg2[%c0_1, %c0_2] : memref<32x128xbf16, #tpu.memory_space<vmem>>, vector<32x128xbf16>
    %cst = arith.constant dense<0.000000e+00> : vector<16x128xf32>
    %3 = tpu.matmul %1, %2, %cst {dimension_numbers = #tpu.dot_dimension_numbers<[1], [0], [0], [1], [0, 0, 1, 1], [], []>} : vector<16x32xbf16>, vector<32x128xbf16>, vector<16x128xf32> -> vector<16x128xf32>
    %c0_3 = arith.constant 0 : index
    %c0_4 = arith.constant 0 : index
    %4 = vector.load %arg3[%c0_3, %c0_4] : memref<1x128xf32, #tpu.memory_space<vmem>>, vector<1x128xf32>
    %5 = vector.broadcast %4 : vector<1x128xf32> to vector<16x128xf32>
    %6 = arith.addf %3, %5 : vector<16x128xf32>
    %cst_5 = arith.constant 0.000000e+00 : f32
    %7 = vector.broadcast %cst_5 : f32 to vector<16x128xf32>
    %8 = arith.maximumf %6, %7 : vector<16x128xf32>
    %9 = arith.truncf %8 : vector<16x128xf32> to vector<16x128xbf16>
    %c0_6 = arith.constant 0 : index
    %c0_7 = arith.constant 0 : index
    %10 = vector.load %arg4[%c0_6, %c0_7] : memref<128x128xbf16, #tpu.memory_space<vmem>>, vector<128x128xbf16>
    %cst_8 = arith.constant dense<0.000000e+00> : vector<16x128xf32>
    %11 = tpu.matmul %9, %10, %cst_8 {dimension_numbers = #tpu.dot_dimension_numbers<[1], [0], [0], [1], [0, 0, 1, 1], [], []>} : vector<16x128xbf16>, vector<128x128xbf16>, vector<16x128xf32> -> vector<16x128xf32>
    %c0_9 = arith.constant 0 : index
    %c0_10 = arith.constant 0 : index
    %12 = vector.load %arg5[%c0_9, %c0_10] : memref<1x128xf32, #tpu.memory_space<vmem>>, vector<1x128xf32>
    %13 = vector.broadcast %12 : vector<1x128xf32> to vector<16x128xf32>
    %14 = arith.addf %11, %13 : vector<16x128xf32>
    %15 = arith.truncf %14 : vector<16x128xf32> to vector<16x128xbf16>
    %c0_11 = arith.constant 0 : index
    %c0_12 = arith.constant 0 : index
    %16 = vector.load %arg6[%c0_11, %c0_12] : memref<16x128xbf16, #tpu.memory_space<vmem>>, vector<16x128xbf16>
    tpu.vector_store %arg6[%c0_11, %c0_12], %15 {strides = array<i32>} : memref<16x128xbf16, #tpu.memory_space<vmem>>, vector<16x128xbf16>,
    return
  }
  func.func @transform_0(%arg0: i32) -> (i32, i32) {
    %c0_i32 = arith.constant 0 : i32
    %c0_i32_0 = arith.constant 0 : i32
    return %arg0, %c0_i32 : i32, i32
  }
  func.func @transform_1(%arg0: i32) -> (i32, i32) {
    %c0_i32 = arith.constant 0 : i32
    %c0_i32_0 = arith.constant 0 : i32
    %c0_i32_1 = arith.constant 0 : i32
    return %c0_i32, %c0_i32_0 : i32, i32
  }
  func.func @transform_2(%arg0: i32) -> (i32, i32) {
    %c0_i32 = arith.constant 0 : i32
    %c0_i32_0 = arith.constant 0 : i32
    %c0_i32_1 = arith.constant 0 : i32
    return %c0_i32, %c0_i32_0 : i32, i32
  }
  func.func @transform_3(%arg0: i32) -> (i32, i32) {
    %c0_i32 = arith.constant 0 : i32
    %c0_i32_0 = arith.constant 0 : i32
    %c0_i32_1 = arith.constant 0 : i32
    return %c0_i32, %c0_i32_0 : i32, i32
  }
  func.func @transform_4(%arg0: i32) -> (i32, i32) {
    %c0_i32 = arith.constant 0 : i32
    %c0_i32_0 = arith.constant 0 : i32
    %c0_i32_1 = arith.constant 0 : i32
    return %c0_i32, %c0_i32_0 : i32, i32
  }
  func.func @transform_5(%arg0: i32) -> (i32, i32) {
    %c0_i32 = arith.constant 0 : i32
    %c0_i32_0 = arith.constant 0 : i32
    return %arg0, %c0_i32 : i32, i32
  }
}

</mosaic_0001>

<bundles_post_ra>
// kernel: mlp_forward.1
= control target key start
LH: loop header
LB: loop body
LE: loop exit
PB: predicated region body
PF: predicated region fallthrough
CT: control target
= control target key end

     0   :  { %10 = vsyncpa [#allocation3], 0  ;;  %s335_s18 = smov [#allocation2]   ;;  %s394_s0 = inlined_call_operand.vmem [shape: f32[16,32], index: 0, kind: input, shape index: {}]   ;;  %s395_s1 = inlined_call_operand.vmem [shape: bf16[32,128], index: 1, kind: input, shape index: {}]   ;;  %s396_s2 = inlined_call_operand.vmem [shape: f32[1,128], index: 2, kind: input, shape index: {}]   ;;  %s397_s3 = inlined_call_operand.hbm [shape: bf16[128,128], index: 3, kind: input, shape index: {}]   ;;  %s398_s4 = inlined_call_operand.vmem [shape: f32[1,128], index: 4, kind: input, shape index: {}]   ;;  %s399_s5 = inlined_call_operand.vmem [shape: bf16[16,128], index: 5, kind: output, shape index: {}]  }
   0x1   :  { %s22_s19 = sshll.u32 %s335_s18, 4  ;;  %s23_s19 = int_to_ptr.vmem [resolvable:$true] %s22_s19 }
   0x2   :  { %s321_s20 = scalar_lea.vmem %s23_s19, 1024  ;;  %p326_p1 = scmp.lt.s32.totalorder %s23_s19, %s23_s19 }
   0x3   :  { %p322_p0 = scmp.ne.s32.totalorder %s23_s19, %s321_s20  ;;  %p327_p2 = scmp.lt.s32.totalorder %s321_s20, %s321_s20 }
   0x5   :  { %p328_p3 = por %p327_p2, %p326_p1 }
   0x7   :  { %p329_p4 = pnand %p328_p3, %p322_p0 }
   0x9   :  { %332 = shalt.err (!%p329_p4)
}
   0xa   :  { %s336_s21 = smov 64   ;;  %s337_s22 = smov 4  }
   0xb   :  { %28 = dma.hbm_to_vmem [thread:$0]  %s397_s3, 1024, %s23_s19, [#allocation3], %s336_s21, %s336_s21, %s337_s22  }
   0xc   :  { %333 = dma.done.wait [#allocation3], 1024  }
   0xd   :  { %334 = vsyncadd [#allocation3], 4294966272  ;;  %v338_v0 = vmov 0.0   ;;  %vm339_vm0 = vmmov 0   ;;  %v303_v1 = vld [vmem:[%s395_s1 + $0x8] sm:$0xff]   ;;  %v304_v2 = vld [vmem:[%s395_s1] sm:$0xff]  }
   0xe   :  { %270 = vmatprep.subr.bf16.mxu0 %v338_v0  ;;  %274 = vmatprep.mubr.msk.bf16.mxu0 %vm339_vm0, %v338_v0  ;;  %v35_v3 = vld [vmem:[%s394_s0] sm:$0xff]  ;;  %v36_v4 = vld [vmem:[%s394_s0 + $0x8] sm:$0xff]  ;;  %v305_v5 = vld [vmem:[#allocation2 + $0x38] sm:$0xff]   ;;  %vm61_vm1 = vcmask 261120  }
   0xf   :  { %278 = vmatprep.subr.bf16.mxu1 %v338_v0  ;;  %294 = vmatprep.mubr.msk.bf16.mxu1 %vm339_vm0, %v338_v0  ;;  %v37_v6 = vpack.c.bf16 %v36_v4, %v35_v3  ;;  %v306_v7 = vld [vmem:[#allocation2 + $0x30] sm:$0xff]   ;;  %v307_v8 = vld [vmem:[#allocation2 + $0x28] sm:$0xff]   ;;  %v308_v9 = vld [vmem:[#allocation2 + $0x20] sm:$0xff]  }
  0x10   :  { %271 = vmatpush3.bf16.msra.mxu0 %v303_v1  ;;  %279 = vmatpush3.bf16.msra.mxu1 %v305_v5  ;;  %v309_v10 = vld [vmem:[#allocation2 + $0x18] sm:$0xff]   ;;  %v310_v11 = vld [vmem:[#allocation2 + $0x10] sm:$0xff]   ;;  %v311_v12 = vld [vmem:[#allocation2 + $0x8] sm:$0xff]  }
  0x11   :  { %272 = vmatprep.subr.bf16.mxu0 %v338_v0  ;;  %280 = vmatprep.subr.bf16.mxu1 %v338_v0  ;;  %v312_v13 = vld [vmem:[#allocation2] sm:$0xff]  }
  0x12   :  { %v236_v14 = vld [vmem:[%s396_s2] ss:$0 sm:$0xff] }
  0x13   :  { %v240_v25 = vld [vmem:[%s398_s4] ss:$0 sm:$0xff] }
  0x14   :  { %273 = vmatpush3.bf16.msra.mxu0 %v304_v2  ;;  %281 = vmatpush3.bf16.msra.mxu1 %v306_v7 }
  0x15   :  { %282 = vmatprep.subr.bf16.mxu1 %v338_v0 }
  0x17   :  { %275 = vmatmul.mubr.msk.bf16.vlgmr.msra.gmra.mxu0 %vm61_vm1, %v37_v6 }
  0x18   :  { %283 = vmatpush3.bf16.msra.mxu1 %v307_v8 }
  0x19   :  { %284 = vmatprep.subr.bf16.mxu1 %v338_v0 }
  0x1c   :  { %285 = vmatpush3.bf16.msra.mxu1 %v308_v9 }
  0x1d   :  { %286 = vmatprep.subr.bf16.mxu1 %v338_v0 }
  0x20   :  { %287 = vmatpush3.bf16.msra.mxu1 %v309_v10 }
  0x21   :  { %288 = vmatprep.subr.bf16.mxu1 %v338_v0 }
  0x24   :  { %289 = vmatpush3.bf16.msra.mxu1 %v310_v11 }
  0x25   :  { %290 = vmatprep.subr.bf16.mxu1 %v338_v0 }
  0x28   :  { %291 = vmatpush3.bf16.msra.mxu1 %v311_v12 }
  0x29   :  { %292 = vmatprep.subr.bf16.mxu1 %v338_v0 }
  0x2c   :  { %293 = vmatpush3.bf16.msra.mxu1 %v312_v13 }
  0xd7   :  { %v99_v15 = vpop.f32.mrf.mxu0 }
  0xd8   :  { %v100_v17 = vadd.f32 %v236_v14, %v99_v15 }
  0xd9   :  { %v276_v16 = vpop.f32.mrf.mxu0 }
  0xda   :  { %v106_v21 = vmax.f32 %v100_v17, 0.0 }
  0xdb   :  { %v102_v18 = vpop.f32.mrf.mxu0 }
  0xdc   :  { %v103_v19 = vadd.f32 %v236_v14, %v102_v18 }
  0xdd   :  { %v277_v20 = vpop.f32.mrf.mxu0 }
  0xde   :  { %v107_v22 = vmax.f32 %v103_v19, 0.0 }
  0xe0   :  { %v108_v23 = vpack.c.bf16 %v107_v22, %v106_v21 }
  0xe2   :  { %295 = vmatmul.mubr.bf16.vlgmr.msra.gmra.mxu1 %v108_v23 }
 0x1a2   :  { %v214_v24 = vpop.f32.mrf.mxu1 }
 0x1a3   :  { %v215_v28 = vadd.f32 %v240_v25, %v214_v24 }
 0x1a4   :  { %v296_v26 = vpop.f32.mrf.mxu1 }
 0x1a6   :  { %v217_v27 = vpop.f32.mrf.mxu1 }
 0x1a7   :  { %v218_v29 = vadd.f32 %v240_v25, %v217_v27 }
 0x1a8   :  { %v297_v30 = vpop.f32.mrf.mxu1 }
 0x1a9   :  { %v256_v31 = vpack.c.bf16 %v218_v29, %v215_v28 }
 0x1ab   :  { %257 = vst [vmem:[%s399_s5] sm:$0xff] %v256_v31  }
 0x1ac   :  { %235 = vsyncpa [#allocation3], 1 }

</bundles_post_ra>
